<compile_context>
chip_gen: v7x
topology: tpu7x:2x2x1
jax: 0.10.0
libtpu: 0.0.40
codegen_flags: <defaults>
</compile_context>

<pallas_src>
import jax
import jax.numpy as jnp
from jax.experimental import pallas as pl
from jax.experimental.pallas import tpu as pltpu

IGNORE_LB = 255
_LANE = 128
_MAX_TILE_PX = 32768          # pixels per grid step (multiple of 128)
_CLASSLOOP_MAX_C = 32         # unroll bound for the per-class-loop layout


# ----------------------------------------------------------------------------
# Kernels
# ----------------------------------------------------------------------------

def _ce_kernel_classloop(logits_ref, labels_ref, out_ref):
    """Small-C layout: full-width vregs, static per-class loop.

    logits_ref: (1, C, R_tile, 128) native dtype (f32/bf16)
    labels_ref: (1, 1, R_tile, 128) int32 (padded tail = IGNORE_LB)
    out_ref:    (1, R_tile, 128)    f32, resident accumulator across axis 1 grid
    """
    t = pl.program_id(1)

    @pl.when(t == 0)
    def _():
        out_ref[...] = jnp.zeros_like(out_ref)

    C = logits_ref.shape[1]
    lbl = labels_ref[0, 0]                                   # (R_tile, 128)

    # pass 1: max over classes (full-width vmax per class)
    m = logits_ref[0, 0].astype(jnp.float32)
    for c in range(1, C):
        m = jnp.maximum(m, logits_ref[0, c].astype(jnp.float32))

    # pass 2: sum of exp(x - m) and gather of (x_label - m) via select
    s = jnp.zeros_like(m)
    gathered = jnp.zeros_like(m)
    for c in range(C):
        xc = logits_ref[0, c].astype(jnp.float32) - m
        s = s + jnp.exp(xc)
        gathered = jnp.where(lbl == c, xc, gathered)

    # loss = lse - x_label = (m + log s) - (gathered + m) = log s - gathered.
    # Ignored (and padded-tail) pixels contribute exactly 0 via a true select,
    # so garbage in masked-DMA tail rows never propagates.
    valid = lbl != IGNORE_LB
    loss = jnp.where(valid, jnp.log(s) - gathered, 0.0)      # (R_tile, 128)
    out_ref[...] += loss[None]


def _ce_kernel_sublane(logits_ref, labels_ref, out_ref):
    """Fallback layout: classes on sublanes, pixels lane-dense.

    logits_ref: (1, C, TILE_PX) native dtype (f32/bf16)
    labels_ref: (1, 1, TILE_PX) int32 (padded tail = IGNORE_LB)
    out_ref:    (1, 1, TILE_PX) f32, resident accumulator across axis 1 grid
    """
    t = pl.program_id(1)

    @pl.when(t == 0)
    def _():
        out_ref[...] = jnp.zeros_like(out_ref)

    x = logits_ref[0].astype(jnp.float32)                    # (C, TILE_PX)
    lbl = labels_ref[0]                                      # (1, TILE_PX)

    m = jnp.max(x, axis=0, keepdims=True)                    # (1, TILE_PX)
    xm = x - m                                               # x dead after this

    # gather the (shifted) logit at the label index via a single select
    cls = jax.lax.broadcasted_iota(jnp.int32, xm.shape, 0)   # (C, TILE_PX)
    gathered = jnp.sum(jnp.where(cls == lbl, xm, 0.0), axis=0, keepdims=True)

    lse_m = jnp.log(jnp.sum(jnp.exp(xm), axis=0, keepdims=True))

    valid = lbl != IGNORE_LB
    loss = jnp.where(valid, lse_m - gathered, 0.0)           # (1, TILE_PX)
    out_ref[...] += loss[None]


# ----------------------------------------------------------------------------
# Tile / VMEM budgeting (generation-aware)
# ----------------------------------------------------------------------------

def _vmem_limit_bytes():
    try:
        cap = int(pltpu.get_tpu_info().vmem_capacity_bytes)
    except Exception:
        cap = 64 * 1024 * 1024  # conservative (v7x physical per-TC)
    # leave headroom; ~48 MiB on v7x (64 MiB physical), capped at 96 MiB on
    # v5e/v6e (128 MiB physical).
    return int(min(cap * 3 // 4, 96 * 1024 * 1024))


def _pick_rows(R, C, itemsize, budget):
    """Path A: rows of 128 pixels per grid step, multiple of 8 (or full R)."""
    # per 128-px row: double-buffered logits+labels inputs, ~10 live f32
    # full-width temps in the class loop, plus the resident f32 accumulator.
    per_row = _LANE * (2 * (C * itemsize + 4) + 10 * 4 + 4)
    max_rows = max(1, budget // per_row)
    max_rows = min(max_rows, _MAX_TILE_PX // _LANE)
    if max_rows >= R:
        return R
    return max(8, (max_rows // 8) * 8)


def _pick_tile_px(hw, C, itemsize, budget):
    """Path B: lane-dense pixel tile, multiple of 128."""
    # double-buffered inputs + ~4 (C, tile) f32 temps + small (1, tile) temps.
    per_px = 2 * (C * itemsize + 4) + (4 * C + 4) * 4
    tile = max(_LANE, (budget // per_px) // _LANE * _LANE)
    tile = min(tile, _MAX_TILE_PX)
    hw_pad = -(-hw // _LANE) * _LANE
    return min(tile, hw_pad)


# ----------------------------------------------------------------------------
# Wrapper
# ----------------------------------------------------------------------------

@jax.jit
def regular_cross_loss(logits, labels):
    """logits: (N, C, H, W) float (f32/bf16); labels: (N, H, W) int.

    Returns scalar f32: mean over all N*H*W pixels of per-pixel CE loss
    (ignored pixels contribute 0 but still count in the denominator), matching
    CrossEntropyLoss(ignore_index=255, reduction='none') followed by torch.mean.
    """
    N, C, H, W = logits.shape
    HW = H * W
    P = N * HW

    if not jnp.issubdtype(logits.dtype, jnp.floating):
        logits = logits.astype(jnp.float32)
    itemsize = jnp.dtype(logits.dtype).itemsize

    vmem_limit = _vmem_limit_bytes()
    budget = (vmem_limit * 4) // 5

    y = labels.reshape(N, HW).astype(jnp.int32)

    use_classloop = (HW % _LANE == 0) and (C <= _CLASSLOOP_MAX_C)

    if use_classloop:
        # ---- Path A: (N, C, R, 128) free view, per-class loop in the kernel.
        R = HW // _LANE
        r_tile = _pick_rows(R, C, itemsize, budget)
        T = -(-R // r_tile)
        x = logits.reshape(N, C, R, _LANE)
        px_pad = T * r_tile * _LANE
        if px_pad != HW:
            y = jnp.pad(y, ((0, 0), (0, px_pad - HW)), constant_values=IGNORE_LB)
        y = y.reshape(N, T, r_tile, _LANE)

        partials = pl.pallas_call(
            _ce_kernel_classloop,
            out_shape=jax.ShapeDtypeStruct((N, r_tile, _LANE), jnp.float32),
            grid_spec=pltpu.PrefetchScalarGridSpec(
                num_scalar_prefetch=0,
                grid=(N, T),
                in_specs=[
                    pl.BlockSpec((1, C, r_tile, _LANE), lambda n, t: (n, 0, t, 0)),
                    pl.BlockSpec((1, 1, r_tile, _LANE), lambda n, t: (n, t, 0, 0)),
                ],
                out_specs=pl.BlockSpec((1, r_tile, _LANE), lambda n, t: (n, 0, 0)),
            ),
            compiler_params=pltpu.CompilerParams(
                dimension_semantics=("parallel", "arbitrary"),
                vmem_limit_bytes=vmem_limit,
            ),
        )(x, y)
    else:
        # ---- Path B: (N, C, HW) free view, classes on sublanes.
        tile_px = _pick_tile_px(HW, C, itemsize, budget)
        T = -(-HW // tile_px)
        hw_pad = T * tile_px
        x = logits.reshape(N, C, HW)
        if hw_pad != HW:
            y = jnp.pad(y, ((0, 0), (0, hw_pad - HW)), constant_values=IGNORE_LB)
        y = y.reshape(N, T, tile_px)

        partials = pl.pallas_call(
            _ce_kernel_sublane,
            out_shape=jax.ShapeDtypeStruct((N, 1, tile_px), jnp.float32),
            grid_spec=pltpu.PrefetchScalarGridSpec(
                num_scalar_prefetch=0,
                grid=(N, T),
                in_specs=[
                    pl.BlockSpec((1, C, tile_px), lambda n, t: (n, 0, t)),
                    pl.BlockSpec((1, 1, tile_px), lambda n, t: (n, t, 0)),
                ],
                out_specs=pl.BlockSpec((1, 1, tile_px), lambda n, t: (n, 0, 0)),
            ),
            compiler_params=pltpu.CompilerParams(
                dimension_semantics=("parallel", "arbitrary"),
                vmem_limit_bytes=vmem_limit,
            ),
        )(x, y)

    # Final tiny reduction + mean in XLA (tree-structured, good numerics).
    return (jnp.sum(partials) / jnp.float32(P)).astype(jnp.float32)


# ----------------------------------------------------------------------------
# Reference + tests
# ----------------------------------------------------------------------------

def _reference(logits, labels):
    N, C, H, W = logits.shape
    x = jnp.transpose(logits, (0, 2, 3, 1)).reshape(-1, C).astype(jnp.float32)
    y = labels.reshape(-1)
    lse = jax.scipy.special.logsumexp(x, axis=-1)
    gathered = jnp.take_along_axis(x, jnp.clip(y, 0, C - 1)[:, None], axis=-1)[:, 0]
    loss = jnp.where(y == IGNORE_LB, 0.0, lse - gathered)
    return jnp.mean(loss)


if __name__ == "__main__":
    key = jax.random.PRNGKey(0)
    k1, k2, k3 = jax.random.split(key, 3)

    # --- Path A (small C, per-class-loop layout), f32 ---
    N, C, H, W = 2, 4, 16, 16
    logits = jax.random.normal(k1, (N, C, H, W), dtype=jnp.float32)
    labels = jax.random.randint(k2, (N, H, W), 0, C, dtype=jnp.int32)
    ignore_mask = jax.random.bernoulli(k3, 0.1, (N, H, W))
    labels = jnp.where(ignore_mask, IGNORE_LB, labels)

    out = regular_cross_loss(logits, labels)
    jax.block_until_ready(out)
    ref = _reference(logits, labels)
    assert jnp.allclose(out, ref, rtol=1e-5, atol=1e-5), (out, ref)

    # --- Path A, bf16 logits (native bf16 HBM read, f32 math in VMEM) ---
    logits_bf16 = logits.astype(jnp.bfloat16)
    out_bf = regular_cross_loss(logits_bf16, labels)
    jax.block_until_ready(out_bf)
    ref_bf = _reference(logits_bf16.astype(jnp.float32), labels)
    assert jnp.allclose(out_bf, ref_bf, rtol=1e-4, atol=1e-4), (out_bf, ref_bf)

    # --- Path B (larger C, classes-on-sublanes layout), f32 ---
    C2 = 40
    logits2 = jax.random.normal(k1, (N, C2, H, W), dtype=jnp.float32)
    labels2 = jax.random.randint(k2, (N, H, W), 0, C2, dtype=jnp.int32)
    labels2 = jnp.where(ignore_mask, IGNORE_LB, labels2)
    out2 = regular_cross_loss(logits2, labels2)
    jax.block_until_ready(out2)
    ref2 = _reference(logits2, labels2)
    assert jnp.allclose(out2, ref2, rtol=1e-5, atol=1e-5), (out2, ref2)

    print("KERNEL_OK")
</pallas_src>

<mosaic_0001>
module attributes {stable_mosaic.version = 11 : i64} {
  func.func @_ce_kernel_classloop(%arg0: i32, %arg1: i32, %arg2: memref<1x4x2x128xf32, #tpu.memory_space<vmem>>, %arg3: memref<1x1x2x128xi32, #tpu.memory_space<vmem>>, %arg4: memref<1x2x128xf32, #tpu.memory_space<vmem>>) attributes {dimension_semantics = [#tpu.dimension_semantics<parallel>, #tpu.dimension_semantics<arbitrary>], iteration_bounds = array<i64: 2, 1>, scalar_prefetch = 0 : i64, scratch_operands = 0 : i64, tpu.core_type = #tpu.core_type<tc>, window_params = [{transform_indices = @transform_0, window_bounds = array<i64: 1, 4, 2, 128>}, {transform_indices = @transform_1, window_bounds = array<i64: 1, 1, 2, 128>}, {transform_indices = @transform_2, window_bounds = array<i64: 1, 2, 128>}]} {
    %c0_i32 = arith.constant 0 : i32
    %0 = arith.cmpi eq, %arg1, %c0_i32 : i32
    %1 = arith.extui %0 : i1 to i32
    %c0_i32_0 = arith.constant 0 : i32
    %2 = arith.cmpi ne, %1, %c0_i32_0 : i32
    scf.if %2 {
      %cst_42 = arith.constant 0.000000e+00 : f32
      %60 = vector.broadcast %cst_42 : f32 to vector<1x2x128xf32>
      %c0_43 = arith.constant 0 : index
      %c0_44 = arith.constant 0 : index
      %c0_45 = arith.constant 0 : index
      %61 = vector.load %arg4[%c0_43, %c0_44, %c0_45] : memref<1x2x128xf32, #tpu.memory_space<vmem>>, vector<1x2x128xf32>
      tpu.vector_store %arg4[%c0_43, %c0_44, %c0_45], %60 {strides = array<i32>} : memref<1x2x128xf32, #tpu.memory_space<vmem>>, vector<1x2x128xf32>,
    } else {
    }
    %c0 = arith.constant 0 : index
    %c0_1 = arith.constant 0 : index
    %c0_2 = arith.constant 0 : index
    %c0_3 = arith.constant 0 : index
    %3 = vector.load %arg3[%c0, %c0_1, %c0_2, %c0_3] : memref<1x1x2x128xi32, #tpu.memory_space<vmem>>, vector<1x1x2x128xi32>
    %4 = vector.shape_cast %3 : vector<1x1x2x128xi32> to vector<2x128xi32>
    %c0_4 = arith.constant 0 : index
    %c0_5 = arith.constant 0 : index
    %c0_6 = arith.constant 0 : index
    %c0_7 = arith.constant 0 : index
    %5 = vector.load %arg2[%c0_4, %c0_5, %c0_6, %c0_7] : memref<1x4x2x128xf32, #tpu.memory_space<vmem>>, vector<1x1x2x128xf32>
    %6 = vector.shape_cast %5 : vector<1x1x2x128xf32> to vector<2x128xf32>
    %c0_8 = arith.constant 0 : index
    %c1 = arith.constant 1 : index
    %c0_9 = arith.constant 0 : index
    %c0_10 = arith.constant 0 : index
    %7 = vector.load %arg2[%c0_8, %c1, %c0_9, %c0_10] : memref<1x4x2x128xf32, #tpu.memory_space<vmem>>, vector<1x1x2x128xf32>
    %8 = vector.shape_cast %7 : vector<1x1x2x128xf32> to vector<2x128xf32>
    %9 = arith.maximumf %6, %8 : vector<2x128xf32>
    %c0_11 = arith.constant 0 : index
    %c2 = arith.constant 2 : index
    %c0_12 = arith.constant 0 : index
    %c0_13 = arith.constant 0 : index
    %10 = vector.load %arg2[%c0_11, %c2, %c0_12, %c0_13] : memref<1x4x2x128xf32, #tpu.memory_space<vmem>>, vector<1x1x2x128xf32>
    %11 = vector.shape_cast %10 : vector<1x1x2x128xf32> to vector<2x128xf32>
    %12 = arith.maximumf %9, %11 : vector<2x128xf32>
    %c0_14 = arith.constant 0 : index
    %c3 = arith.constant 3 : index
    %c0_15 = arith.constant 0 : index
    %c0_16 = arith.constant 0 : index
    %13 = vector.load %arg2[%c0_14, %c3, %c0_15, %c0_16] : memref<1x4x2x128xf32, #tpu.memory_space<vmem>>, vector<1x1x2x128xf32>
    %14 = vector.shape_cast %13 : vector<1x1x2x128xf32> to vector<2x128xf32>
    %15 = arith.maximumf %12, %14 : vector<2x128xf32>
    %cst = arith.constant 0.000000e+00 : f32
    %16 = vector.broadcast %cst : f32 to vector<2x128xf32>
    %cst_17 = arith.constant 0.000000e+00 : f32
    %17 = vector.broadcast %cst_17 : f32 to vector<2x128xf32>
    %c0_18 = arith.constant 0 : index
    %c0_19 = arith.constant 0 : index
    %c0_20 = arith.constant 0 : index
    %c0_21 = arith.constant 0 : index
    %18 = vector.load %arg2[%c0_18, %c0_19, %c0_20, %c0_21] : memref<1x4x2x128xf32, #tpu.memory_space<vmem>>, vector<1x1x2x128xf32>
    %19 = vector.shape_cast %18 : vector<1x1x2x128xf32> to vector<2x128xf32>
    %20 = arith.subf %19, %15 : vector<2x128xf32>
    %21 = math.exp %20 : vector<2x128xf32>
    %22 = arith.addf %16, %21 : vector<2x128xf32>
    %c0_i32_22 = arith.constant 0 : i32
    %23 = vector.broadcast %c0_i32_22 : i32 to vector<2x128xi32>
    %24 = arith.cmpi eq, %4, %23 : vector<2x128xi32>
    %25 = arith.select %24, %20, %17 : vector<2x128xi1>, vector<2x128xf32>
    %c0_23 = arith.constant 0 : index
    %c1_24 = arith.constant 1 : index
    %c0_25 = arith.constant 0 : index
    %c0_26 = arith.constant 0 : index
    %26 = vector.load %arg2[%c0_23, %c1_24, %c0_25, %c0_26] : memref<1x4x2x128xf32, #tpu.memory_space<vmem>>, vector<1x1x2x128xf32>
    %27 = vector.shape_cast %26 : vector<1x1x2x128xf32> to vector<2x128xf32>
    %28 = arith.subf %27, %15 : vector<2x128xf32>
    %29 = math.exp %28 : vector<2x128xf32>
    %30 = arith.addf %22, %29 : vector<2x128xf32>
    %c1_i32 = arith.constant 1 : i32
    %31 = vector.broadcast %c1_i32 : i32 to vector<2x128xi32>
    %32 = arith.cmpi eq, %4, %31 : vector<2x128xi32>
    %33 = arith.select %32, %28, %25 : vector<2x128xi1>, vector<2x128xf32>
    %c0_27 = arith.constant 0 : index
    %c2_28 = arith.constant 2 : index
    %c0_29 = arith.constant 0 : index
    %c0_30 = arith.constant 0 : index
    %34 = vector.load %arg2[%c0_27, %c2_28, %c0_29, %c0_30] : memref<1x4x2x128xf32, #tpu.memory_space<vmem>>, vector<1x1x2x128xf32>
    %35 = vector.shape_cast %34 : vector<1x1x2x128xf32> to vector<2x128xf32>
    %36 = arith.subf %35, %15 : vector<2x128xf32>
    %37 = math.exp %36 : vector<2x128xf32>
    %38 = arith.addf %30, %37 : vector<2x128xf32>
    %c2_i32 = arith.constant 2 : i32
    %39 = vector.broadcast %c2_i32 : i32 to vector<2x128xi32>
    %40 = arith.cmpi eq, %4, %39 : vector<2x128xi32>
    %41 = arith.select %40, %36, %33 : vector<2x128xi1>, vector<2x128xf32>
    %c0_31 = arith.constant 0 : index
    %c3_32 = arith.constant 3 : index
    %c0_33 = arith.constant 0 : index
    %c0_34 = arith.constant 0 : index
    %42 = vector.load %arg2[%c0_31, %c3_32, %c0_33, %c0_34] : memref<1x4x2x128xf32, #tpu.memory_space<vmem>>, vector<1x1x2x128xf32>
    %43 = vector.shape_cast %42 : vector<1x1x2x128xf32> to vector<2x128xf32>
    %44 = arith.subf %43, %15 : vector<2x128xf32>
    %45 = math.exp %44 : vector<2x128xf32>
    %46 = arith.addf %38, %45 : vector<2x128xf32>
    %c3_i32 = arith.constant 3 : i32
    %47 = vector.broadcast %c3_i32 : i32 to vector<2x128xi32>
    %48 = arith.cmpi eq, %4, %47 : vector<2x128xi32>
    %49 = arith.select %48, %44, %41 : vector<2x128xi1>, vector<2x128xf32>
    %c255_i32 = arith.constant 255 : i32
    %50 = vector.broadcast %c255_i32 : i32 to vector<2x128xi32>
    %51 = arith.cmpi ne, %4, %50 : vector<2x128xi32>
    %52 = math.log %46 : vector<2x128xf32>
    %53 = arith.subf %52, %49 : vector<2x128xf32>
    %cst_35 = arith.constant 0.000000e+00 : f32
    %54 = vector.broadcast %cst_35 : f32 to vector<2x128xf32>
    %55 = arith.select %51, %53, %54 : vector<2x128xi1>, vector<2x128xf32>
    %c0_36 = arith.constant 0 : index
    %c0_37 = arith.constant 0 : index
    %c0_38 = arith.constant 0 : index
    %56 = vector.load %arg4[%c0_36, %c0_37, %c0_38] : memref<1x2x128xf32, #tpu.memory_space<vmem>>, vector<1x2x128xf32>
    %57 = vector.shape_cast %55 : vector<2x128xf32> to vector<1x2x128xf32>
    %58 = arith.addf %56, %57 : vector<1x2x128xf32>
    %c0_39 = arith.constant 0 : index
    %c0_40 = arith.constant 0 : index
    %c0_41 = arith.constant 0 : index
    %59 = vector.load %arg4[%c0_39, %c0_40, %c0_41] : memref<1x2x128xf32, #tpu.memory_space<vmem>>, vector<1x2x128xf32>
    tpu.vector_store %arg4[%c0_39, %c0_40, %c0_41], %58 {strides = array<i32>} : memref<1x2x128xf32, #tpu.memory_space<vmem>>, vector<1x2x128xf32>,
    return
  }
  func.func @transform_0(%arg0: i32, %arg1: i32) -> (i32, i32, i32, i32) {
    %c0_i32 = arith.constant 0 : i32
    %c0_i32_0 = arith.constant 0 : i32
    %c0_i32_1 = arith.constant 0 : i32
    return %arg0, %c0_i32, %arg1, %c0_i32_0 : i32, i32, i32, i32
  }
  func.func @transform_1(%arg0: i32, %arg1: i32) -> (i32, i32, i32, i32) {
    %c0_i32 = arith.constant 0 : i32
    %c0_i32_0 = arith.constant 0 : i32
    %c0_i32_1 = arith.constant 0 : i32
    return %arg0, %arg1, %c0_i32, %c0_i32_0 : i32, i32, i32, i32
  }
  func.func @transform_2(%arg0: i32, %arg1: i32) -> (i32, i32, i32) {
    %c0_i32 = arith.constant 0 : i32
    %c0_i32_0 = arith.constant 0 : i32
    %c0_i32_1 = arith.constant 0 : i32
    return %arg0, %c0_i32, %c0_i32_0 : i32, i32, i32
  }
}

</mosaic_0001>

<bundles_post_ra>
// kernel: regular_cross_loss.1
= control target key start
LH: loop header
LB: loop body
LE: loop exit
PB: predicated region body
PF: predicated region fallthrough
CT: control target
= control target key end

     0   :  { %s413_s9 = smov 0   ;;  %s415_s10 = smov 0   ;;  %s454_s0 = inlined_call_operand.vmem [shape: f32[2,4,2,128], index: 0, kind: input, shape index: {}]   ;;  %s455_s1 = inlined_call_operand.vmem [shape: s32[2,1,2,128], index: 1, kind: input, shape index: {}]   ;;  %s456_s2 = inlined_call_operand.vmem [shape: f32[2,2,128], index: 2, kind: output, shape index: {}]  }
   0x1   :  { %s417_s11 = smov 0  }
   0x2 LB: > { %s24_s12 = sadd.s32 1, %s391_s10  ;;  %p327_p0 = scmp.ge.s32.totalorder %s395_s11, 1  ;;  %s395_s11 = sphi %s417_s11, %s12_s11   ;;  %s391_s10 = sphi %s415_s10, %s458_s10   ;;  %s387_s9 = sphi %s413_s9, %s457_s9  }
   0x3   : > { %p26_p1 = scmp.ge.s32.totalorder %s24_s12, 2  ;;  %p143_p2 = scmp.lt.s32.totalorder %s395_s11, 3 }
   0x5   : > { %s460_s12 = smov (%p26_p1, %s24_s12), 0  ;;  %p144_p3 = pnand %p327_p0, %p143_p2 }
   0x6   : > { %p174_p4 = scmp.lt.s32.totalorder (!%p144_p3), %s387_s9, 1  ;;  %v397_v2 = vmov (!%p144_p3), 0.0  }
   0x7   : > { %147 = sbr.rel (%p144_p3) target bundleno = 65 (0x41), region = 28 }
   0xe   : > { %s462_s9 = smov (!%p174_p4, %s387_s9), 1 }
   0xf   : > { %s337_s13 = sshll.u32 %s462_s9, 3  ;;  %s330_s14 = sshll.u32 %s462_s9, 1 }
  0x10   : > { %s181_s17 = scalar_lea.vmem %s454_s0, %s337_s13  ;;  %s437_s20 = scalar_lea.vmem %s456_s2, %s330_s14 }
  0x11   : > { %v199_v0 = vld [vmem:[%s181_s17] sm:$0x3]  ;;  %v332_v1 = vld [vmem:[%s181_s17 + $0x2] sm:$0x3]  ;;  %197 = vst [vmem:[%s437_s20] sm:$0x3] %v397_v2  ;;  %s188_s23 = scalar_lea.vmem %s455_s1, %s330_s14 }
  0x12   : > { %v202_v3 = vmax.f32 %v199_v0, %v332_v1  ;;  %v333_v4 = vld [vmem:[%s181_s17 + $0x4] sm:$0x3]  ;;  %v334_v5 = vld [vmem:[%s181_s17 + $0x6] sm:$0x3]  ;;  %v198_v21 = vld [vmem:[%s188_s23] sm:$0x3] }
  0x13   : > { %vm213_vm0 = vcmp.eq.s32.totalorder %v198_v21, 0  ;;  %vm219_vm1 = vcmp.eq.s32.totalorder %v198_v21, 1  ;;  %vm225_vm2 = vcmp.eq.s32.totalorder %v198_v21, 2  ;;  %vm231_vm3 = vcmp.eq.s32.totalorder %v198_v21, 3 }
  0x14   : > { %v205_v6 = vmax.f32 %v202_v3, %v333_v4  ;;  %vm233_vm4 = vcmp.ne.s32.totalorder %v198_v21, 255 }
  0x16   : > { %v208_v7 = vmax.f32 %v205_v6, %v334_v5 }
  0x18   : > { %v209_v8 = vsub.f32 %v199_v0, %v208_v7  ;;  %v215_v9 = vsub.f32 %v332_v1, %v208_v7  ;;  %v221_v10 = vsub.f32 %v333_v4, %v208_v7  ;;  %v227_v11 = vsub.f32 %v334_v5, %v208_v7  ;;  %v238_v31 = vld [vmem:[%s437_s20] sm:$0x3] }
  0x1a   : > { %v210_v12 = vmul.f32 1.442695, %v209_v8  ;;  %v216_v13 = vmul.f32 1.442695, %v215_v9  ;;  %v222_v14 = vmul.f32 1.442695, %v221_v10 }
  0x1b   : > { %v228_v15 = vmul.f32 1.442695, %v227_v11  ;;  %v214_v24 = vsel %vm213_vm0, %v209_v8, 0.0 }
  0x1c   : > { %363 = vpow2.f32 %v210_v12  ;;  %v220_v25 = vsel %vm219_vm1, %v215_v9, %v214_v24 }
  0x1d   : > { %365 = vpow2.f32 %v216_v13  ;;  %v226_v26 = vsel %vm225_vm2, %v221_v10, %v220_v25 }
  0x1e   : > { %367 = vpow2.f32 %v222_v14  ;;  %v232_v28 = vsel %vm231_vm3, %v227_v11, %v226_v26 }
  0x1f   : > { %369 = vpow2.f32 %v228_v15 }
  0x26   : > { %v364_v16 = vpop.eup %363 }
  0x27   : > { %v366_v17 = vpop.eup %365 }
  0x28   : > { %v368_v18 = vpop.eup %367  ;;  %v218_v19 = vadd.f32 %v366_v17, %v364_v16 }
  0x29   : > { %v370_v20 = vpop.eup %369 }
  0x2a   : > { %v224_v22 = vadd.f32 %v368_v18, %v218_v19 }
  0x2c   : > { %v230_v23 = vadd.f32 %v370_v20, %v224_v22 }
  0x2e   : > { %371 = vlog2.f32 %v230_v23 }
  0x38   : > { %v372_v27 = vpop.eup %371 }
  0x39   : > { %v235_v29 = vmul.f32 0.6931472, %v372_v27 }
  0x3b   : > { %v236_v30 = vsub.f32 %v235_v29, %v232_v28 }
  0x3d   : > { %v237_v32 = vsel %vm233_vm4, %v236_v30, 0.0 }
  0x3e   : > { %v239_v33 = vadd.f32 %v238_v31, %v237_v32 }
  0x40   : > { %240 = vst [vmem:[%s437_s20] sm:$0x3] %v239_v33 }
  0x41 PF: > { %s12_s11 = sadd.s32 1, %s395_s11   ;;  %s457_s9 = smov %s391_s10 }
  0x42   : > { %p9_p5 = scmp.ge.s32.totalorder %s12_s11, 4   ;;  %s458_s10 = smov %s460_s12 }
  0x44   :  { %11 = sbr.rel (!%p9_p5) target bundleno = 2 (0x2), region = 68 }

</bundles_post_ra>
